<compile_context>
chip_gen: v5e
topology: v5e:2x2
jax: 0.10.0
libtpu: 0.0.40
codegen_flags: <defaults>
</compile_context>

<pallas_src>
import functools

import jax
import jax.numpy as jnp
from jax import lax
from jax.experimental import pallas as pl
from jax.experimental.pallas import tpu as pltpu

LANE = 128
MXU_DTYPE = jnp.bfloat16    # matmul operand dtype (accumulation stays f32)
ACT_DTYPE = jnp.bfloat16    # inter-stage activation storage dtype (HBM)


def _vmem_limit_bytes():
    """Scoped-VMEM limit gated on chip generation (128 MiB parts vs 64 MiB v7x)."""
    try:
        cap = getattr(pltpu.get_tpu_info(), "vmem_capacity_bytes", None)
    except Exception:
        cap = None
    if cap is None:
        return 32 * 1024 * 1024          # unknown -> conservative, safe everywhere
    if cap >= 100 * 1024 * 1024:
        return 96 * 1024 * 1024          # v5e / v6e (128 MiB physical VMEM)
    return 40 * 1024 * 1024              # v7x (64 MiB physical VMEM)


def _compiler_params(vmem_limit):
    return pltpu.CompilerParams(
        dimension_semantics=("parallel",),   # batch-block axis -> megacore on v7x
        vmem_limit_bytes=vmem_limit)


def _pick_batch_block(n, lp, c_in, c_out, vmem_limit):
    """Samples per grid step: lane-dense tiles, but keep >=2 grid steps (two
    v7x TensorCores) and stay inside the double-buffered VMEM budget."""
    per_sample = lp * (c_in * 4 + 4 * c_out * 2)   # worst-stage HBM tile bytes
    best = 1
    for b in range(1, n + 1):
        if n % b:
            continue
        if n >= 2 and n // b < 2:        # keep >=2 grid steps for megacore
            continue
        if b * lp > 4096:                # diminishing returns past a few K lanes
            continue
        if 4 * b * per_sample > vmem_limit:
            continue
        best = b
    return best


def _stage_kernel(*refs, apply_affine, relu_in, pad, length,
                  has_residual, has_shortcut):
    """One residual-block stage on a lane-packed (C, B*Lp) activation block.

    Applies the previous stage's folded BN scale/shift (+ optional ReLU), runs
    the k=3 conv as three accumulating per-tap MXU dots (plus the 1x1 shortcut
    dot in stage 1), optionally adds the residual, stores the bf16 activation
    and emits per-block partial BN statistics over the valid positions.
    """
    it = iter(refs)
    pos_ref = next(it)
    if apply_affine:
        scale_ref = next(it)
        shift_ref = next(it)
    act_ref = next(it)
    w_ref = next(it)
    res_ref = next(it) if has_residual else None
    y_ref = next(it)
    xs_ref = next(it) if has_shortcut else None
    ssum_ref = next(it)
    ssq_ref = next(it)

    w_lanes = act_ref.shape[1]
    pos = pos_ref[...]                        # (1, W) lane index within each sample
    valid = (pos < length) if pad else None

    # previous stage's BN folded into a per-channel scale/shift (f32), opt. ReLU.
    h = act_ref[...].astype(jnp.float32)
    if apply_affine:
        h = h * scale_ref[...] + shift_ref[...]
    if relu_in:
        h = jnp.maximum(h, 0.0)
    if pad and apply_affine:
        h = jnp.where(valid, h, 0.0)          # re-zero padded tail (conv halo)

    # k=3 taps via XLU lane rotation (np.roll convention: roll(x, 1)[l] == x[l-1]).
    h_m1 = pltpu.roll(h, 1, 1)
    h_p1 = pltpu.roll(h, w_lanes - 1, 1)
    if not pad:
        # no zero halo between samples -> mask the conv boundaries explicitly.
        h_m1 = jnp.where(pos == 0, 0.0, h_m1)
        h_p1 = jnp.where(pos == length - 1, 0.0, h_p1)

    h_c = h.astype(MXU_DTYPE)
    acc = jnp.dot(w_ref[1], h_c, preferred_element_type=jnp.float32)
    acc += jnp.dot(w_ref[0], h_m1.astype(MXU_DTYPE),
                   preferred_element_type=jnp.float32)
    acc += jnp.dot(w_ref[2], h_p1.astype(MXU_DTYPE),
                   preferred_element_type=jnp.float32)

    if has_shortcut:                          # 1x1 nin shortcut (centre tap only)
        xs_ref[...] = jnp.dot(w_ref[3], h_c,
                              preferred_element_type=jnp.float32
                              ).astype(xs_ref.dtype)
    if has_residual:
        acc += res_ref[...].astype(jnp.float32)

    y_ref[...] = acc.astype(y_ref.dtype)

    # one-pass BN statistics on the f32 accumulator (reduced in the wrapper).
    ym = jnp.where(valid, acc, 0.0) if pad else acc
    ssum_ref[0] = jnp.sum(ym, axis=1, keepdims=True)
    ssq_ref[0] = jnp.sum(ym * ym, axis=1, keepdims=True)


def _finalize_kernel(scale_ref, shift_ref, r_ref, o_ref):
    y = r_ref[...].astype(jnp.float32) * scale_ref[...] + shift_ref[...]
    o_ref[...] = jnp.maximum(y, 0.0).astype(o_ref.dtype)


def _fold_bn(ssum, ssq, gamma, beta, count, eps):
    """Reduce per-block stats and fold training-mode BN into scale/shift."""
    s = jnp.sum(ssum[:, :, 0], axis=0)
    q = jnp.sum(ssq[:, :, 0], axis=0)
    mean = s / count
    var = jnp.maximum(q / count - mean * mean, 0.0)   # biased (training mode)
    scale = gamma.astype(jnp.float32) * lax.rsqrt(var + eps)
    shift = beta.astype(jnp.float32) - mean * scale
    return scale[:, None], shift[:, None]


def _stage_call(pos, act, w, scale, shift, *, relu_in, length, lp, bb, c_out,
                vmem_limit, residual=None, shortcut=False):
    c_act, total = act.shape
    bw = bb * lp
    nb = total // bw
    pad = lp > length
    apply_affine = scale is not None

    kern = functools.partial(
        _stage_kernel, apply_affine=apply_affine, relu_in=relu_in, pad=pad,
        length=length, has_residual=residual is not None, has_shortcut=shortcut)

    pos_spec = pl.BlockSpec((1, bw), lambda i: (0, 0))
    vec_spec = pl.BlockSpec((c_act, 1), lambda i: (0, 0))
    act_spec = pl.BlockSpec((c_act, bw), lambda i: (0, i))
    oact_spec = pl.BlockSpec((c_out, bw), lambda i: (0, i))
    w_spec = pl.BlockSpec(w.shape, lambda i: (0, 0, 0))
    stat_spec = pl.BlockSpec((1, c_out, 1), lambda i: (i, 0, 0))

    in_specs = [pos_spec]
    inputs = [pos]
    if apply_affine:
        in_specs += [vec_spec, vec_spec]
        inputs += [scale, shift]
    in_specs += [act_spec, w_spec]
    inputs += [act, w]
    if residual is not None:
        in_specs.append(oact_spec)
        inputs.append(residual)

    out_shapes = [jax.ShapeDtypeStruct((c_out, total), ACT_DTYPE)]
    out_specs = [oact_spec]
    if shortcut:
        out_shapes.append(jax.ShapeDtypeStruct((c_out, total), ACT_DTYPE))
        out_specs.append(oact_spec)
    out_shapes += [jax.ShapeDtypeStruct((nb, c_out, 1), jnp.float32)] * 2
    out_specs += [stat_spec, stat_spec]

    return pl.pallas_call(
        kern,
        grid=(nb,),
        in_specs=in_specs,
        out_specs=tuple(out_specs),
        out_shape=tuple(out_shapes),
        compiler_params=_compiler_params(vmem_limit),
    )(*inputs)


def rsm1d_forward(x, params, eps=1e-5):
    """RSM1D forward (training-mode BN). x: (N, C_in, L) -> (N, C_out, L)."""
    n, c_in, length = x.shape
    c_out = params["w1"].shape[0]
    lp = pl.cdiv(length, LANE) * LANE
    vmem_limit = _vmem_limit_bytes()
    bb = _pick_batch_block(n, lp, c_in, c_out, vmem_limit)
    count = n * length

    # Per-tap weight stacks [tap l-1, centre, tap l+1]; nin folded as 4th slab.
    w1s = jnp.concatenate(
        [jnp.transpose(params["w1"], (2, 0, 1)),
         jnp.transpose(params["wn"], (2, 0, 1))], axis=0).astype(MXU_DTYPE)
    w2s = jnp.transpose(params["w2"], (2, 0, 1)).astype(MXU_DTYPE)
    w3s = jnp.transpose(params["w3"], (2, 0, 1)).astype(MXU_DTYPE)

    # Lane-pack: (N, C, L) -> (C, N*Lp); each sample's zero tail doubles as the
    # k=3 conv halo between samples.
    xp = jnp.pad(x.astype(jnp.float32), ((0, 0), (0, 0), (0, lp - length)))
    xp = jnp.transpose(xp, (1, 0, 2)).reshape(c_in, n * lp)

    # per-sample lane index (shared by every grid step and every mask).
    pos = jnp.tile(jnp.arange(lp, dtype=jnp.int32), bb).reshape(1, bb * lp)

    common = dict(length=length, lp=lp, bb=bb, c_out=c_out,
                  vmem_limit=vmem_limit)

    # stage 1: conv1 (+ folded 1x1 shortcut) and bn1 statistics
    y1, xs, s1, q1 = _stage_call(pos, xp, w1s, None, None, relu_in=False,
                                 shortcut=True, **common)
    sc1, sh1 = _fold_bn(s1, q1, params["g1"], params["b1"], count, eps)

    # stage 2: relu(bn1) -> conv2 and bn2 statistics
    y2, s2, q2 = _stage_call(pos, y1, w2s, sc1, sh1, relu_in=True, **common)
    sc2, sh2 = _fold_bn(s2, q2, params["g2"], params["b2"], count, eps)

    # stage 3: relu(bn2) -> conv3 + shortcut residual and bn3 statistics
    r, s3, q3 = _stage_call(pos, y2, w3s, sc2, sh2, relu_in=True,
                            residual=xs, **common)
    sc3, sh3 = _fold_bn(s3, q3, params["g3"], params["b3"], count, eps)

    # finalize: relu(bn3) on full lane-dense blocks; padding stripped outside.
    bw = bb * lp
    nb = n // bb
    out_packed = pl.pallas_call(
        _finalize_kernel,
        grid=(nb,),
        in_specs=[pl.BlockSpec((c_out, 1), lambda i: (0, 0)),
                  pl.BlockSpec((c_out, 1), lambda i: (0, 0)),
                  pl.BlockSpec((c_out, bw), lambda i: (0, i))],
        out_specs=pl.BlockSpec((c_out, bw), lambda i: (0, i)),
        out_shape=jax.ShapeDtypeStruct((c_out, n * lp), x.dtype),
        compiler_params=_compiler_params(vmem_limit),
    )(sc3, sh3, r)

    # unpack: (C_out, N*Lp) -> (N, C_out, L)
    out = out_packed.reshape(c_out, n, lp)[:, :, :length]
    return jnp.transpose(out, (1, 0, 2))


def _reference(x, p, eps=1e-5):
    """Pure-JAX reference in PyTorch NCW layout (sanity check only)."""
    def conv(v, w, pad):
        return lax.conv_general_dilated(
            v, w, (1,), [(pad, pad)], dimension_numbers=("NCH", "OIH", "NCH"))

    def bn(y, g, b):
        m = jnp.mean(y, axis=(0, 2), keepdims=True)
        v = jnp.mean((y - m) ** 2, axis=(0, 2), keepdims=True)
        return (y - m) / jnp.sqrt(v + eps) * g[None, :, None] + b[None, :, None]

    yy = jax.nn.relu(bn(conv(x, p["w1"], 1), p["g1"], p["b1"]))
    yy = jax.nn.relu(bn(conv(yy, p["w2"], 1), p["g2"], p["b2"]))
    yy = conv(yy, p["w3"], 1)
    xs = conv(x, p["wn"], 0)
    return jax.nn.relu(bn(xs + yy, p["g3"], p["b3"]))


if __name__ == "__main__":
    N, Cin, Cout, L = 2, 4, 8, 16
    key = jax.random.PRNGKey(0)
    k = jax.random.split(key, 6)

    params = {
        "w1": 0.1 * jax.random.normal(k[0], (Cout, Cin, 3), jnp.float32),
        "w2": 0.1 * jax.random.normal(k[1], (Cout, Cout, 3), jnp.float32),
        "w3": 0.1 * jax.random.normal(k[2], (Cout, Cout, 3), jnp.float32),
        "wn": 0.1 * jax.random.normal(k[3], (Cout, Cin, 1), jnp.float32),
        "g1": jnp.ones((Cout,), jnp.float32), "b1": jnp.zeros((Cout,), jnp.float32),
        "g2": jnp.ones((Cout,), jnp.float32), "b2": jnp.zeros((Cout,), jnp.float32),
        "g3": jnp.ones((Cout,), jnp.float32), "b3": jnp.zeros((Cout,), jnp.float32),
    }
    x = jax.random.normal(k[4], (N, Cin, L), jnp.float32)

    out = jax.block_until_ready(jax.jit(rsm1d_forward)(x, params))
    ref = jax.block_until_ready(_reference(x, params))
    assert out.shape == (N, Cout, L), out.shape
    max_err = float(jnp.max(jnp.abs(out - ref)))
    # bf16 MXU operands + bf16 inter-stage storage across three stacked stages
    # -> typical max abs error ~1e-2 vs the f32 reference.
    assert jnp.allclose(out, ref, atol=7.5e-2, rtol=7.5e-2), max_err
    print("KERNEL_OK")
</pallas_src>

<mosaic_0001>
module attributes {stable_mosaic.version = 11 : i64} {
  func.func @_stage_kernel(%arg0: i32, %arg1: memref<1x128xi32, #tpu.memory_space<vmem>>, %arg2: memref<4x128xf32, #tpu.memory_space<vmem>>, %arg3: memref<4x8x4xbf16, #tpu.memory_space<vmem>>, %arg4: memref<8x128xbf16, #tpu.memory_space<vmem>>, %arg5: memref<8x128xbf16, #tpu.memory_space<vmem>>, %arg6: memref<1x8x1xf32, #tpu.memory_space<vmem>>, %arg7: memref<1x8x1xf32, #tpu.memory_space<vmem>>) attributes {dimension_semantics = [#tpu.dimension_semantics<parallel>], iteration_bounds = array<i64: 2>, scalar_prefetch = 0 : i64, scratch_operands = 0 : i64, tpu.core_type = #tpu.core_type<tc>, window_params = [{pipeline_mode = #tpu.pipeline_mode<synchronous>, transform_indices = @transform_0, window_bounds = array<i64: 1, 128>}, {transform_indices = @transform_1, window_bounds = array<i64: 4, 128>}, {pipeline_mode = #tpu.pipeline_mode<synchronous>, transform_indices = @transform_2, window_bounds = array<i64: 4, 8, 4>}, {transform_indices = @transform_3, window_bounds = array<i64: 8, 128>}, {transform_indices = @transform_4, window_bounds = array<i64: 8, 128>}, {transform_indices = @transform_5, window_bounds = array<i64: 1, 8, 1>}, {transform_indices = @transform_6, window_bounds = array<i64: 1, 8, 1>}]} {
    %c0 = arith.constant 0 : index
    %c0_0 = arith.constant 0 : index
    %0 = vector.load %arg1[%c0, %c0_0] : memref<1x128xi32, #tpu.memory_space<vmem>>, vector<1x128xi32>
    %c16_i32 = arith.constant 16 : i32
    %1 = vector.broadcast %c16_i32 : i32 to vector<1x128xi32>
    %2 = arith.cmpi slt, %0, %1 : vector<1x128xi32>
    %c0_1 = arith.constant 0 : index
    %c0_2 = arith.constant 0 : index
    %3 = vector.load %arg2[%c0_1, %c0_2] : memref<4x128xf32, #tpu.memory_space<vmem>>, vector<4x128xf32>
    %c1_i32 = arith.constant 1 : i32
    %4 = tpu.dynamic_rotate %3 by %c1_i32 dim 1 : vector<4x128xf32>, i32 -> vector<4x128xf32>
    %c127_i32 = arith.constant 127 : i32
    %5 = tpu.dynamic_rotate %3 by %c127_i32 dim 1 : vector<4x128xf32>, i32 -> vector<4x128xf32>
    %6 = arith.truncf %3 : vector<4x128xf32> to vector<4x128xbf16>
    %c1 = arith.constant 1 : index
    %c0_3 = arith.constant 0 : index
    %c0_4 = arith.constant 0 : index
    %7 = vector.load %arg3[%c1, %c0_3, %c0_4] : memref<4x8x4xbf16, #tpu.memory_space<vmem>>, vector<1x8x4xbf16>
    %8 = vector.shape_cast %7 : vector<1x8x4xbf16> to vector<8x4xbf16>
    %cst = arith.constant dense<0.000000e+00> : vector<8x128xf32>
    %9 = tpu.matmul %8, %6, %cst {dimension_numbers = #tpu.dot_dimension_numbers<[1], [0], [0], [1], [0, 0, 1, 1], [], []>} : vector<8x4xbf16>, vector<4x128xbf16>, vector<8x128xf32> -> vector<8x128xf32>
    %c0_5 = arith.constant 0 : index
    %c0_6 = arith.constant 0 : index
    %c0_7 = arith.constant 0 : index
    %10 = vector.load %arg3[%c0_5, %c0_6, %c0_7] : memref<4x8x4xbf16, #tpu.memory_space<vmem>>, vector<1x8x4xbf16>
    %11 = vector.shape_cast %10 : vector<1x8x4xbf16> to vector<8x4xbf16>
    %12 = arith.truncf %4 : vector<4x128xf32> to vector<4x128xbf16>
    %cst_8 = arith.constant dense<0.000000e+00> : vector<8x128xf32>
    %13 = tpu.matmul %11, %12, %cst_8 {dimension_numbers = #tpu.dot_dimension_numbers<[1], [0], [0], [1], [0, 0, 1, 1], [], []>} : vector<8x4xbf16>, vector<4x128xbf16>, vector<8x128xf32> -> vector<8x128xf32>
    %14 = arith.addf %9, %13 : vector<8x128xf32>
    %c2 = arith.constant 2 : index
    %c0_9 = arith.constant 0 : index
    %c0_10 = arith.constant 0 : index
    %15 = vector.load %arg3[%c2, %c0_9, %c0_10] : memref<4x8x4xbf16, #tpu.memory_space<vmem>>, vector<1x8x4xbf16>
    %16 = vector.shape_cast %15 : vector<1x8x4xbf16> to vector<8x4xbf16>
    %17 = arith.truncf %5 : vector<4x128xf32> to vector<4x128xbf16>
    %cst_11 = arith.constant dense<0.000000e+00> : vector<8x128xf32>
    %18 = tpu.matmul %16, %17, %cst_11 {dimension_numbers = #tpu.dot_dimension_numbers<[1], [0], [0], [1], [0, 0, 1, 1], [], []>} : vector<8x4xbf16>, vector<4x128xbf16>, vector<8x128xf32> -> vector<8x128xf32>
    %19 = arith.addf %14, %18 : vector<8x128xf32>
    %c3 = arith.constant 3 : index
    %c0_12 = arith.constant 0 : index
    %c0_13 = arith.constant 0 : index
    %20 = vector.load %arg3[%c3, %c0_12, %c0_13] : memref<4x8x4xbf16, #tpu.memory_space<vmem>>, vector<1x8x4xbf16>
    %21 = vector.shape_cast %20 : vector<1x8x4xbf16> to vector<8x4xbf16>
    %cst_14 = arith.constant dense<0.000000e+00> : vector<8x128xf32>
    %22 = tpu.matmul %21, %6, %cst_14 {dimension_numbers = #tpu.dot_dimension_numbers<[1], [0], [0], [1], [0, 0, 1, 1], [], []>} : vector<8x4xbf16>, vector<4x128xbf16>, vector<8x128xf32> -> vector<8x128xf32>
    %23 = arith.truncf %22 : vector<8x128xf32> to vector<8x128xbf16>
    %c0_15 = arith.constant 0 : index
    %c0_16 = arith.constant 0 : index
    %24 = vector.load %arg5[%c0_15, %c0_16] : memref<8x128xbf16, #tpu.memory_space<vmem>>, vector<8x128xbf16>
    tpu.vector_store %arg5[%c0_15, %c0_16], %23 {strides = array<i32>} : memref<8x128xbf16, #tpu.memory_space<vmem>>, vector<8x128xbf16>,
    %25 = arith.truncf %19 : vector<8x128xf32> to vector<8x128xbf16>
    %c0_17 = arith.constant 0 : index
    %c0_18 = arith.constant 0 : index
    %26 = vector.load %arg4[%c0_17, %c0_18] : memref<8x128xbf16, #tpu.memory_space<vmem>>, vector<8x128xbf16>
    tpu.vector_store %arg4[%c0_17, %c0_18], %25 {strides = array<i32>} : memref<8x128xbf16, #tpu.memory_space<vmem>>, vector<8x128xbf16>,
    %cst_19 = arith.constant 0.000000e+00 : f32
    %27 = vector.shape_cast %2 : vector<1x128xi1> to vector<1x128xi1>
    %28 = vector.broadcast %27 : vector<1x128xi1> to vector<8x128xi1>
    %29 = vector.broadcast %cst_19 : f32 to vector<8x128xf32>
    %30 = arith.select %28, %19, %29 : vector<8x128xi1>, vector<8x128xf32>
    %cst_20 = arith.constant dense<0.000000e+00> : vector<8xf32>
    %31 = vector.multi_reduction <add>, %30, %cst_20 [1] : vector<8x128xf32> to vector<8xf32>
    %32 = vector.shape_cast %31 : vector<8xf32> to vector<8x1xf32>
    %c0_21 = arith.constant 0 : index
    %c0_22 = arith.constant 0 : index
    %c0_23 = arith.constant 0 : index
    %33 = vector.load %arg6[%c0_21, %c0_22, %c0_23] : memref<1x8x1xf32, #tpu.memory_space<vmem>>, vector<1x8x1xf32>
    %34 = vector.shape_cast %33 : vector<1x8x1xf32> to vector<8x1xf32>
    %35 = vector.shape_cast %32 : vector<8x1xf32> to vector<1x8x1xf32>
    tpu.vector_store %arg6[%c0_21, %c0_22, %c0_23], %35 {strides = array<i32>} : memref<1x8x1xf32, #tpu.memory_space<vmem>>, vector<1x8x1xf32>,
    %36 = arith.mulf %30, %30 : vector<8x128xf32>
    %cst_24 = arith.constant dense<0.000000e+00> : vector<8xf32>
    %37 = vector.multi_reduction <add>, %36, %cst_24 [1] : vector<8x128xf32> to vector<8xf32>
    %38 = vector.shape_cast %37 : vector<8xf32> to vector<8x1xf32>
    %c0_25 = arith.constant 0 : index
    %c0_26 = arith.constant 0 : index
    %c0_27 = arith.constant 0 : index
    %39 = vector.load %arg7[%c0_25, %c0_26, %c0_27] : memref<1x8x1xf32, #tpu.memory_space<vmem>>, vector<1x8x1xf32>
    %40 = vector.shape_cast %39 : vector<1x8x1xf32> to vector<8x1xf32>
    %41 = vector.shape_cast %38 : vector<8x1xf32> to vector<1x8x1xf32>
    tpu.vector_store %arg7[%c0_25, %c0_26, %c0_27], %41 {strides = array<i32>} : memref<1x8x1xf32, #tpu.memory_space<vmem>>, vector<1x8x1xf32>,
    return
  }
  func.func @transform_0(%arg0: i32) -> (i32, i32) {
    %c0_i32 = arith.constant 0 : i32
    %c0_i32_0 = arith.constant 0 : i32
    %c0_i32_1 = arith.constant 0 : i32
    return %c0_i32, %c0_i32_0 : i32, i32
  }
  func.func @transform_1(%arg0: i32) -> (i32, i32) {
    %c0_i32 = arith.constant 0 : i32
    %c0_i32_0 = arith.constant 0 : i32
    return %c0_i32, %arg0 : i32, i32
  }
  func.func @transform_2(%arg0: i32) -> (i32, i32, i32) {
    %c0_i32 = arith.constant 0 : i32
    %c0_i32_0 = arith.constant 0 : i32
    %c0_i32_1 = arith.constant 0 : i32
    %c0_i32_2 = arith.constant 0 : i32
    return %c0_i32, %c0_i32_0, %c0_i32_1 : i32, i32, i32
  }
  func.func @transform_3(%arg0: i32) -> (i32, i32) {
    %c0_i32 = arith.constant 0 : i32
    %c0_i32_0 = arith.constant 0 : i32
    return %c0_i32, %arg0 : i32, i32
  }
  func.func @transform_4(%arg0: i32) -> (i32, i32) {
    %c0_i32 = arith.constant 0 : i32
    %c0_i32_0 = arith.constant 0 : i32
    return %c0_i32, %arg0 : i32, i32
  }
  func.func @transform_5(%arg0: i32) -> (i32, i32, i32) {
    %c0_i32 = arith.constant 0 : i32
    %c0_i32_0 = arith.constant 0 : i32
    %c0_i32_1 = arith.constant 0 : i32
    return %arg0, %c0_i32, %c0_i32_0 : i32, i32, i32
  }
  func.func @transform_6(%arg0: i32) -> (i32, i32, i32) {
    %c0_i32 = arith.constant 0 : i32
    %c0_i32_0 = arith.constant 0 : i32
    %c0_i32_1 = arith.constant 0 : i32
    return %arg0, %c0_i32, %c0_i32_0 : i32, i32, i32
  }
}

module attributes {stable_mosaic.version = 11 : i64} {
  func.func @_stage_kernel(%arg0: i32, %arg1: memref<1x128xi32, #tpu.memory_space<vmem>>, %arg2: memref<8x1xf32, #tpu.memory_space<vmem>>, %arg3: memref<8x1xf32, #tpu.memory_space<vmem>>, %arg4: memref<8x128xbf16, #tpu.memory_space<vmem>>, %arg5: memref<3x8x8xbf16, #tpu.memory_space<vmem>>, %arg6: memref<8x128xbf16, #tpu.memory_space<vmem>>, %arg7: memref<1x8x1xf32, #tpu.memory_space<vmem>>, %arg8: memref<1x8x1xf32, #tpu.memory_space<vmem>>) attributes {dimension_semantics = [#tpu.dimension_semantics<parallel>], iteration_bounds = array<i64: 2>, scalar_prefetch = 0 : i64, scratch_operands = 0 : i64, tpu.core_type = #tpu.core_type<tc>, window_params = [{pipeline_mode = #tpu.pipeline_mode<synchronous>, transform_indices = @transform_0, window_bounds = array<i64: 1, 128>}, {pipeline_mode = #tpu.pipeline_mode<synchronous>, transform_indices = @transform_1, window_bounds = array<i64: 8, 1>}, {pipeline_mode = #tpu.pipeline_mode<synchronous>, transform_indices = @transform_2, window_bounds = array<i64: 8, 1>}, {transform_indices = @transform_3, window_bounds = array<i64: 8, 128>}, {pipeline_mode = #tpu.pipeline_mode<synchronous>, transform_indices = @transform_4, window_bounds = array<i64: 3, 8, 8>}, {transform_indices = @transform_5, window_bounds = array<i64: 8, 128>}, {transform_indices = @transform_6, window_bounds = array<i64: 1, 8, 1>}, {transform_indices = @transform_7, window_bounds = array<i64: 1, 8, 1>}]} {
    %c0 = arith.constant 0 : index
    %c0_0 = arith.constant 0 : index
    %0 = vector.load %arg1[%c0, %c0_0] : memref<1x128xi32, #tpu.memory_space<vmem>>, vector<1x128xi32>
    %c16_i32 = arith.constant 16 : i32
    %1 = vector.broadcast %c16_i32 : i32 to vector<1x128xi32>
    %2 = arith.cmpi slt, %0, %1 : vector<1x128xi32>
    %c0_1 = arith.constant 0 : index
    %c0_2 = arith.constant 0 : index
    %3 = vector.load %arg4[%c0_1, %c0_2] : memref<8x128xbf16, #tpu.memory_space<vmem>>, vector<8x128xbf16>
    %4 = arith.extf %3 : vector<8x128xbf16> to vector<8x128xf32>
    %c0_3 = arith.constant 0 : index
    %c0_4 = arith.constant 0 : index
    %5 = vector.load %arg2[%c0_3, %c0_4] : memref<8x1xf32, #tpu.memory_space<vmem>>, vector<8x1xf32>
    %6 = vector.broadcast %5 : vector<8x1xf32> to vector<8x128xf32>
    %7 = arith.mulf %4, %6 : vector<8x128xf32>
    %c0_5 = arith.constant 0 : index
    %c0_6 = arith.constant 0 : index
    %8 = vector.load %arg3[%c0_5, %c0_6] : memref<8x1xf32, #tpu.memory_space<vmem>>, vector<8x1xf32>
    %9 = vector.broadcast %8 : vector<8x1xf32> to vector<8x128xf32>
    %10 = arith.addf %7, %9 : vector<8x128xf32>
    %cst = arith.constant 0.000000e+00 : f32
    %11 = vector.broadcast %cst : f32 to vector<8x128xf32>
    %12 = arith.maximumf %10, %11 : vector<8x128xf32>
    %cst_7 = arith.constant 0.000000e+00 : f32
    %13 = vector.shape_cast %2 : vector<1x128xi1> to vector<1x128xi1>
    %14 = vector.broadcast %13 : vector<1x128xi1> to vector<8x128xi1>
    %15 = vector.broadcast %cst_7 : f32 to vector<8x128xf32>
    %16 = arith.select %14, %12, %15 : vector<8x128xi1>, vector<8x128xf32>
    %c1_i32 = arith.constant 1 : i32
    %17 = tpu.dynamic_rotate %16 by %c1_i32 dim 1 : vector<8x128xf32>, i32 -> vector<8x128xf32>
    %c127_i32 = arith.constant 127 : i32
    %18 = tpu.dynamic_rotate %16 by %c127_i32 dim 1 : vector<8x128xf32>, i32 -> vector<8x128xf32>
    %19 = arith.truncf %16 : vector<8x128xf32> to vector<8x128xbf16>
    %c1 = arith.constant 1 : index
    %c0_8 = arith.constant 0 : index
    %c0_9 = arith.constant 0 : index
    %20 = vector.load %arg5[%c1, %c0_8, %c0_9] : memref<3x8x8xbf16, #tpu.memory_space<vmem>>, vector<1x8x8xbf16>
    %21 = vector.shape_cast %20 : vector<1x8x8xbf16> to vector<8x8xbf16>
    %cst_10 = arith.constant dense<0.000000e+00> : vector<8x128xf32>
    %22 = tpu.matmul %21, %19, %cst_10 {dimension_numbers = #tpu.dot_dimension_numbers<[1], [0], [0], [1], [0, 0, 1, 1], [], []>} : vector<8x8xbf16>, vector<8x128xbf16>, vector<8x128xf32> -> vector<8x128xf32>
    %c0_11 = arith.constant 0 : index
    %c0_12 = arith.constant 0 : index
    %c0_13 = arith.constant 0 : index
    %23 = vector.load %arg5[%c0_11, %c0_12, %c0_13] : memref<3x8x8xbf16, #tpu.memory_space<vmem>>, vector<1x8x8xbf16>
    %24 = vector.shape_cast %23 : vector<1x8x8xbf16> to vector<8x8xbf16>
    %25 = arith.truncf %17 : vector<8x128xf32> to vector<8x128xbf16>
    %cst_14 = arith.constant dense<0.000000e+00> : vector<8x128xf32>
    %26 = tpu.matmul %24, %25, %cst_14 {dimension_numbers = #tpu.dot_dimension_numbers<[1], [0], [0], [1], [0, 0, 1, 1], [], []>} : vector<8x8xbf16>, vector<8x128xbf16>, vector<8x128xf32> -> vector<8x128xf32>
    %27 = arith.addf %22, %26 : vector<8x128xf32>
    %c2 = arith.constant 2 : index
    %c0_15 = arith.constant 0 : index
    %c0_16 = arith.constant 0 : index
    %28 = vector.load %arg5[%c2, %c0_15, %c0_16] : memref<3x8x8xbf16, #tpu.memory_space<vmem>>, vector<1x8x8xbf16>
    %29 = vector.shape_cast %28 : vector<1x8x8xbf16> to vector<8x8xbf16>
    %30 = arith.truncf %18 : vector<8x128xf32> to vector<8x128xbf16>
    %cst_17 = arith.constant dense<0.000000e+00> : vector<8x128xf32>
    %31 = tpu.matmul %29, %30, %cst_17 {dimension_numbers = #tpu.dot_dimension_numbers<[1], [0], [0], [1], [0, 0, 1, 1], [], []>} : vector<8x8xbf16>, vector<8x128xbf16>, vector<8x128xf32> -> vector<8x128xf32>
    %32 = arith.addf %27, %31 : vector<8x128xf32>
    %33 = arith.truncf %32 : vector<8x128xf32> to vector<8x128xbf16>
    %c0_18 = arith.constant 0 : index
    %c0_19 = arith.constant 0 : index
    %34 = vector.load %arg6[%c0_18, %c0_19] : memref<8x128xbf16, #tpu.memory_space<vmem>>, vector<8x128xbf16>
    tpu.vector_store %arg6[%c0_18, %c0_19], %33 {strides = array<i32>} : memref<8x128xbf16, #tpu.memory_space<vmem>>, vector<8x128xbf16>,
    %cst_20 = arith.constant 0.000000e+00 : f32
    %35 = vector.shape_cast %2 : vector<1x128xi1> to vector<1x128xi1>
    %36 = vector.broadcast %35 : vector<1x128xi1> to vector<8x128xi1>
    %37 = vector.broadcast %cst_20 : f32 to vector<8x128xf32>
    %38 = arith.select %36, %32, %37 : vector<8x128xi1>, vector<8x128xf32>
    %cst_21 = arith.constant dense<0.000000e+00> : vector<8xf32>
    %39 = vector.multi_reduction <add>, %38, %cst_21 [1] : vector<8x128xf32> to vector<8xf32>
    %40 = vector.shape_cast %39 : vector<8xf32> to vector<8x1xf32>
    %c0_22 = arith.constant 0 : index
    %c0_23 = arith.constant 0 : index
    %c0_24 = arith.constant 0 : index
    %41 = vector.load %arg7[%c0_22, %c0_23, %c0_24] : memref<1x8x1xf32, #tpu.memory_space<vmem>>, vector<1x8x1xf32>
    %42 = vector.shape_cast %41 : vector<1x8x1xf32> to vector<8x1xf32>
    %43 = vector.shape_cast %40 : vector<8x1xf32> to vector<1x8x1xf32>
    tpu.vector_store %arg7[%c0_22, %c0_23, %c0_24], %43 {strides = array<i32>} : memref<1x8x1xf32, #tpu.memory_space<vmem>>, vector<1x8x1xf32>,
    %44 = arith.mulf %38, %38 : vector<8x128xf32>
    %cst_25 = arith.constant dense<0.000000e+00> : vector<8xf32>
    %45 = vector.multi_reduction <add>, %44, %cst_25 [1] : vector<8x128xf32> to vector<8xf32>
    %46 = vector.shape_cast %45 : vector<8xf32> to vector<8x1xf32>
    %c0_26 = arith.constant 0 : index
    %c0_27 = arith.constant 0 : index
    %c0_28 = arith.constant 0 : index
    %47 = vector.load %arg8[%c0_26, %c0_27, %c0_28] : memref<1x8x1xf32, #tpu.memory_space<vmem>>, vector<1x8x1xf32>
    %48 = vector.shape_cast %47 : vector<1x8x1xf32> to vector<8x1xf32>
    %49 = vector.shape_cast %46 : vector<8x1xf32> to vector<1x8x1xf32>
    tpu.vector_store %arg8[%c0_26, %c0_27, %c0_28], %49 {strides = array<i32>} : memref<1x8x1xf32, #tpu.memory_space<vmem>>, vector<1x8x1xf32>,
    return
  }
  func.func @transform_0(%arg0: i32) -> (i32, i32) {
    %c0_i32 = arith.constant 0 : i32
    %c0_i32_0 = arith.constant 0 : i32
    %c0_i32_1 = arith.constant 0 : i32
    return %c0_i32, %c0_i32_0 : i32, i32
  }
  func.func @transform_1(%arg0: i32) -> (i32, i32) {
    %c0_i32 = arith.constant 0 : i32
    %c0_i32_0 = arith.constant 0 : i32
    %c0_i32_1 = arith.constant 0 : i32
    return %c0_i32, %c0_i32_0 : i32, i32
  }
  func.func @transform_2(%arg0: i32) -> (i32, i32) {
    %c0_i32 = arith.constant 0 : i32
    %c0_i32_0 = arith.constant 0 : i32
    %c0_i32_1 = arith.constant 0 : i32
    return %c0_i32, %c0_i32_0 : i32, i32
  }
  func.func @transform_3(%arg0: i32) -> (i32, i32) {
    %c0_i32 = arith.constant 0 : i32
    %c0_i32_0 = arith.constant 0 : i32
    return %c0_i32, %arg0 : i32, i32
  }
  func.func @transform_4(%arg0: i32) -> (i32, i32, i32) {
    %c0_i32 = arith.constant 0 : i32
    %c0_i32_0 = arith.constant 0 : i32
    %c0_i32_1 = arith.constant 0 : i32
    %c0_i32_2 = arith.constant 0 : i32
    return %c0_i32, %c0_i32_0, %c0_i32_1 : i32, i32, i32
  }
  func.func @transform_5(%arg0: i32) -> (i32, i32) {
    %c0_i32 = arith.constant 0 : i32
    %c0_i32_0 = arith.constant 0 : i32
    return %c0_i32, %arg0 : i32, i32
  }
  func.func @transform_6(%arg0: i32) -> (i32, i32, i32) {
    %c0_i32 = arith.constant 0 : i32
    %c0_i32_0 = arith.constant 0 : i32
    %c0_i32_1 = arith.constant 0 : i32
    return %arg0, %c0_i32, %c0_i32_0 : i32, i32, i32
  }
  func.func @transform_7(%arg0: i32) -> (i32, i32, i32) {
    %c0_i32 = arith.constant 0 : i32
    %c0_i32_0 = arith.constant 0 : i32
    %c0_i32_1 = arith.constant 0 : i32
    return %arg0, %c0_i32, %c0_i32_0 : i32, i32, i32
  }
}

module attributes {stable_mosaic.version = 11 : i64} {
  func.func @_finalize_kernel(%arg0: i32, %arg1: memref<8x1xf32, #tpu.memory_space<vmem>>, %arg2: memref<8x1xf32, #tpu.memory_space<vmem>>, %arg3: memref<8x128xbf16, #tpu.memory_space<vmem>>, %arg4: memref<8x128xf32, #tpu.memory_space<vmem>>) attributes {dimension_semantics = [#tpu.dimension_semantics<parallel>], iteration_bounds = array<i64: 2>, scalar_prefetch = 0 : i64, scratch_operands = 0 : i64, tpu.core_type = #tpu.core_type<tc>, window_params = [{pipeline_mode = #tpu.pipeline_mode<synchronous>, transform_indices = @transform_0, window_bounds = array<i64: 8, 1>}, {pipeline_mode = #tpu.pipeline_mode<synchronous>, transform_indices = @transform_1, window_bounds = array<i64: 8, 1>}, {transform_indices = @transform_2, window_bounds = array<i64: 8, 128>}, {transform_indices = @transform_3, window_bounds = array<i64: 8, 128>}]} {
    %c0 = arith.constant 0 : index
    %c0_0 = arith.constant 0 : index
    %0 = vector.load %arg3[%c0, %c0_0] : memref<8x128xbf16, #tpu.memory_space<vmem>>, vector<8x128xbf16>
    %1 = arith.extf %0 : vector<8x128xbf16> to vector<8x128xf32>
    %c0_1 = arith.constant 0 : index
    %c0_2 = arith.constant 0 : index
    %2 = vector.load %arg1[%c0_1, %c0_2] : memref<8x1xf32, #tpu.memory_space<vmem>>, vector<8x1xf32>
    %3 = vector.broadcast %2 : vector<8x1xf32> to vector<8x128xf32>
    %4 = arith.mulf %1, %3 : vector<8x128xf32>
    %c0_3 = arith.constant 0 : index
    %c0_4 = arith.constant 0 : index
    %5 = vector.load %arg2[%c0_3, %c0_4] : memref<8x1xf32, #tpu.memory_space<vmem>>, vector<8x1xf32>
    %6 = vector.broadcast %5 : vector<8x1xf32> to vector<8x128xf32>
    %7 = arith.addf %4, %6 : vector<8x128xf32>
    %cst = arith.constant 0.000000e+00 : f32
    %8 = vector.broadcast %cst : f32 to vector<8x128xf32>
    %9 = arith.maximumf %7, %8 : vector<8x128xf32>
    %c0_5 = arith.constant 0 : index
    %c0_6 = arith.constant 0 : index
    %10 = vector.load %arg4[%c0_5, %c0_6] : memref<8x128xf32, #tpu.memory_space<vmem>>, vector<8x128xf32>
    tpu.vector_store %arg4[%c0_5, %c0_6], %9 {strides = array<i32>} : memref<8x128xf32, #tpu.memory_space<vmem>>, vector<8x128xf32>,
    return
  }
  func.func @transform_0(%arg0: i32) -> (i32, i32) {
    %c0_i32 = arith.constant 0 : i32
    %c0_i32_0 = arith.constant 0 : i32
    %c0_i32_1 = arith.constant 0 : i32
    return %c0_i32, %c0_i32_0 : i32, i32
  }
  func.func @transform_1(%arg0: i32) -> (i32, i32) {
    %c0_i32 = arith.constant 0 : i32
    %c0_i32_0 = arith.constant 0 : i32
    %c0_i32_1 = arith.constant 0 : i32
    return %c0_i32, %c0_i32_0 : i32, i32
  }
  func.func @transform_2(%arg0: i32) -> (i32, i32) {
    %c0_i32 = arith.constant 0 : i32
    %c0_i32_0 = arith.constant 0 : i32
    return %c0_i32, %arg0 : i32, i32
  }
  func.func @transform_3(%arg0: i32) -> (i32, i32) {
    %c0_i32 = arith.constant 0 : i32
    %c0_i32_0 = arith.constant 0 : i32
    return %c0_i32, %arg0 : i32, i32
  }
}

module attributes {stable_mosaic.version = 11 : i64} {
  func.func @_stage_kernel(%arg0: i32, %arg1: memref<1x128xi32, #tpu.memory_space<vmem>>, %arg2: memref<8x1xf32, #tpu.memory_space<vmem>>, %arg3: memref<8x1xf32, #tpu.memory_space<vmem>>, %arg4: memref<8x128xbf16, #tpu.memory_space<vmem>>, %arg5: memref<3x8x8xbf16, #tpu.memory_space<vmem>>, %arg6: memref<8x128xbf16, #tpu.memory_space<vmem>>, %arg7: memref<8x128xbf16, #tpu.memory_space<vmem>>, %arg8: memref<1x8x1xf32, #tpu.memory_space<vmem>>, %arg9: memref<1x8x1xf32, #tpu.memory_space<vmem>>) attributes {dimension_semantics = [#tpu.dimension_semantics<parallel>], iteration_bounds = array<i64: 2>, scalar_prefetch = 0 : i64, scratch_operands = 0 : i64, tpu.core_type = #tpu.core_type<tc>, window_params = [{pipeline_mode = #tpu.pipeline_mode<synchronous>, transform_indices = @transform_0, window_bounds = array<i64: 1, 128>}, {pipeline_mode = #tpu.pipeline_mode<synchronous>, transform_indices = @transform_1, window_bounds = array<i64: 8, 1>}, {pipeline_mode = #tpu.pipeline_mode<synchronous>, transform_indices = @transform_2, window_bounds = array<i64: 8, 1>}, {transform_indices = @transform_3, window_bounds = array<i64: 8, 128>}, {pipeline_mode = #tpu.pipeline_mode<synchronous>, transform_indices = @transform_4, window_bounds = array<i64: 3, 8, 8>}, {transform_indices = @transform_5, window_bounds = array<i64: 8, 128>}, {transform_indices = @transform_6, window_bounds = array<i64: 8, 128>}, {transform_indices = @transform_7, window_bounds = array<i64: 1, 8, 1>}, {transform_indices = @transform_8, window_bounds = array<i64: 1, 8, 1>}]} {
    %c0 = arith.constant 0 : index
    %c0_0 = arith.constant 0 : index
    %0 = vector.load %arg1[%c0, %c0_0] : memref<1x128xi32, #tpu.memory_space<vmem>>, vector<1x128xi32>
    %c16_i32 = arith.constant 16 : i32
    %1 = vector.broadcast %c16_i32 : i32 to vector<1x128xi32>
    %2 = arith.cmpi slt, %0, %1 : vector<1x128xi32>
    %c0_1 = arith.constant 0 : index
    %c0_2 = arith.constant 0 : index
    %3 = vector.load %arg4[%c0_1, %c0_2] : memref<8x128xbf16, #tpu.memory_space<vmem>>, vector<8x128xbf16>
    %4 = arith.extf %3 : vector<8x128xbf16> to vector<8x128xf32>
    %c0_3 = arith.constant 0 : index
    %c0_4 = arith.constant 0 : index
    %5 = vector.load %arg2[%c0_3, %c0_4] : memref<8x1xf32, #tpu.memory_space<vmem>>, vector<8x1xf32>
    %6 = vector.broadcast %5 : vector<8x1xf32> to vector<8x128xf32>
    %7 = arith.mulf %4, %6 : vector<8x128xf32>
    %c0_5 = arith.constant 0 : index
    %c0_6 = arith.constant 0 : index
    %8 = vector.load %arg3[%c0_5, %c0_6] : memref<8x1xf32, #tpu.memory_space<vmem>>, vector<8x1xf32>
    %9 = vector.broadcast %8 : vector<8x1xf32> to vector<8x128xf32>
    %10 = arith.addf %7, %9 : vector<8x128xf32>
    %cst = arith.constant 0.000000e+00 : f32
    %11 = vector.broadcast %cst : f32 to vector<8x128xf32>
    %12 = arith.maximumf %10, %11 : vector<8x128xf32>
    %cst_7 = arith.constant 0.000000e+00 : f32
    %13 = vector.shape_cast %2 : vector<1x128xi1> to vector<1x128xi1>
    %14 = vector.broadcast %13 : vector<1x128xi1> to vector<8x128xi1>
    %15 = vector.broadcast %cst_7 : f32 to vector<8x128xf32>
    %16 = arith.select %14, %12, %15 : vector<8x128xi1>, vector<8x128xf32>
    %c1_i32 = arith.constant 1 : i32
    %17 = tpu.dynamic_rotate %16 by %c1_i32 dim 1 : vector<8x128xf32>, i32 -> vector<8x128xf32>
    %c127_i32 = arith.constant 127 : i32
    %18 = tpu.dynamic_rotate %16 by %c127_i32 dim 1 : vector<8x128xf32>, i32 -> vector<8x128xf32>
    %19 = arith.truncf %16 : vector<8x128xf32> to vector<8x128xbf16>
    %c1 = arith.constant 1 : index
    %c0_8 = arith.constant 0 : index
    %c0_9 = arith.constant 0 : index
    %20 = vector.load %arg5[%c1, %c0_8, %c0_9] : memref<3x8x8xbf16, #tpu.memory_space<vmem>>, vector<1x8x8xbf16>
    %21 = vector.shape_cast %20 : vector<1x8x8xbf16> to vector<8x8xbf16>
    %cst_10 = arith.constant dense<0.000000e+00> : vector<8x128xf32>
    %22 = tpu.matmul %21, %19, %cst_10 {dimension_numbers = #tpu.dot_dimension_numbers<[1], [0], [0], [1], [0, 0, 1, 1], [], []>} : vector<8x8xbf16>, vector<8x128xbf16>, vector<8x128xf32> -> vector<8x128xf32>
    %c0_11 = arith.constant 0 : index
    %c0_12 = arith.constant 0 : index
    %c0_13 = arith.constant 0 : index
    %23 = vector.load %arg5[%c0_11, %c0_12, %c0_13] : memref<3x8x8xbf16, #tpu.memory_space<vmem>>, vector<1x8x8xbf16>
    %24 = vector.shape_cast %23 : vector<1x8x8xbf16> to vector<8x8xbf16>
    %25 = arith.truncf %17 : vector<8x128xf32> to vector<8x128xbf16>
    %cst_14 = arith.constant dense<0.000000e+00> : vector<8x128xf32>
    %26 = tpu.matmul %24, %25, %cst_14 {dimension_numbers = #tpu.dot_dimension_numbers<[1], [0], [0], [1], [0, 0, 1, 1], [], []>} : vector<8x8xbf16>, vector<8x128xbf16>, vector<8x128xf32> -> vector<8x128xf32>
    %27 = arith.addf %22, %26 : vector<8x128xf32>
    %c2 = arith.constant 2 : index
    %c0_15 = arith.constant 0 : index
    %c0_16 = arith.constant 0 : index
    %28 = vector.load %arg5[%c2, %c0_15, %c0_16] : memref<3x8x8xbf16, #tpu.memory_space<vmem>>, vector<1x8x8xbf16>
    %29 = vector.shape_cast %28 : vector<1x8x8xbf16> to vector<8x8xbf16>
    %30 = arith.truncf %18 : vector<8x128xf32> to vector<8x128xbf16>
    %cst_17 = arith.constant dense<0.000000e+00> : vector<8x128xf32>
    %31 = tpu.matmul %29, %30, %cst_17 {dimension_numbers = #tpu.dot_dimension_numbers<[1], [0], [0], [1], [0, 0, 1, 1], [], []>} : vector<8x8xbf16>, vector<8x128xbf16>, vector<8x128xf32> -> vector<8x128xf32>
    %32 = arith.addf %27, %31 : vector<8x128xf32>
    %c0_18 = arith.constant 0 : index
    %c0_19 = arith.constant 0 : index
    %33 = vector.load %arg6[%c0_18, %c0_19] : memref<8x128xbf16, #tpu.memory_space<vmem>>, vector<8x128xbf16>
    %34 = arith.extf %33 : vector<8x128xbf16> to vector<8x128xf32>
    %35 = arith.addf %32, %34 : vector<8x128xf32>
    %36 = arith.truncf %35 : vector<8x128xf32> to vector<8x128xbf16>
    %c0_20 = arith.constant 0 : index
    %c0_21 = arith.constant 0 : index
    %37 = vector.load %arg7[%c0_20, %c0_21] : memref<8x128xbf16, #tpu.memory_space<vmem>>, vector<8x128xbf16>
    tpu.vector_store %arg7[%c0_20, %c0_21], %36 {strides = array<i32>} : memref<8x128xbf16, #tpu.memory_space<vmem>>, vector<8x128xbf16>,
    %cst_22 = arith.constant 0.000000e+00 : f32
    %38 = vector.shape_cast %2 : vector<1x128xi1> to vector<1x128xi1>
    %39 = vector.broadcast %38 : vector<1x128xi1> to vector<8x128xi1>
    %40 = vector.broadcast %cst_22 : f32 to vector<8x128xf32>
    %41 = arith.select %39, %35, %40 : vector<8x128xi1>, vector<8x128xf32>
    %cst_23 = arith.constant dense<0.000000e+00> : vector<8xf32>
    %42 = vector.multi_reduction <add>, %41, %cst_23 [1] : vector<8x128xf32> to vector<8xf32>
    %43 = vector.shape_cast %42 : vector<8xf32> to vector<8x1xf32>
    %c0_24 = arith.constant 0 : index
    %c0_25 = arith.constant 0 : index
    %c0_26 = arith.constant 0 : index
    %44 = vector.load %arg8[%c0_24, %c0_25, %c0_26] : memref<1x8x1xf32, #tpu.memory_space<vmem>>, vector<1x8x1xf32>
    %45 = vector.shape_cast %44 : vector<1x8x1xf32> to vector<8x1xf32>
    %46 = vector.shape_cast %43 : vector<8x1xf32> to vector<1x8x1xf32>
    tpu.vector_store %arg8[%c0_24, %c0_25, %c0_26], %46 {strides = array<i32>} : memref<1x8x1xf32, #tpu.memory_space<vmem>>, vector<1x8x1xf32>,
    %47 = arith.mulf %41, %41 : vector<8x128xf32>
    %cst_27 = arith.constant dense<0.000000e+00> : vector<8xf32>
    %48 = vector.multi_reduction <add>, %47, %cst_27 [1] : vector<8x128xf32> to vector<8xf32>
    %49 = vector.shape_cast %48 : vector<8xf32> to vector<8x1xf32>
    %c0_28 = arith.constant 0 : index
    %c0_29 = arith.constant 0 : index
    %c0_30 = arith.constant 0 : index
    %50 = vector.load %arg9[%c0_28, %c0_29, %c0_30] : memref<1x8x1xf32, #tpu.memory_space<vmem>>, vector<1x8x1xf32>
    %51 = vector.shape_cast %50 : vector<1x8x1xf32> to vector<8x1xf32>
    %52 = vector.shape_cast %49 : vector<8x1xf32> to vector<1x8x1xf32>
    tpu.vector_store %arg9[%c0_28, %c0_29, %c0_30], %52 {strides = array<i32>} : memref<1x8x1xf32, #tpu.memory_space<vmem>>, vector<1x8x1xf32>,
    return
  }
  func.func @transform_0(%arg0: i32) -> (i32, i32) {
    %c0_i32 = arith.constant 0 : i32
    %c0_i32_0 = arith.constant 0 : i32
    %c0_i32_1 = arith.constant 0 : i32
    return %c0_i32, %c0_i32_0 : i32, i32
  }
  func.func @transform_1(%arg0: i32) -> (i32, i32) {
    %c0_i32 = arith.constant 0 : i32
    %c0_i32_0 = arith.constant 0 : i32
    %c0_i32_1 = arith.constant 0 : i32
    return %c0_i32, %c0_i32_0 : i32, i32
  }
  func.func @transform_2(%arg0: i32) -> (i32, i32) {
    %c0_i32 = arith.constant 0 : i32
    %c0_i32_0 = arith.constant 0 : i32
    %c0_i32_1 = arith.constant 0 : i32
    return %c0_i32, %c0_i32_0 : i32, i32
  }
  func.func @transform_3(%arg0: i32) -> (i32, i32) {
    %c0_i32 = arith.constant 0 : i32
    %c0_i32_0 = arith.constant 0 : i32
    return %c0_i32, %arg0 : i32, i32
  }
  func.func @transform_4(%arg0: i32) -> (i32, i32, i32) {
    %c0_i32 = arith.constant 0 : i32
    %c0_i32_0 = arith.constant 0 : i32
    %c0_i32_1 = arith.constant 0 : i32
    %c0_i32_2 = arith.constant 0 : i32
    return %c0_i32, %c0_i32_0, %c0_i32_1 : i32, i32, i32
  }
  func.func @transform_5(%arg0: i32) -> (i32, i32) {
    %c0_i32 = arith.constant 0 : i32
    %c0_i32_0 = arith.constant 0 : i32
    return %c0_i32, %arg0 : i32, i32
  }
  func.func @transform_6(%arg0: i32) -> (i32, i32) {
    %c0_i32 = arith.constant 0 : i32
    %c0_i32_0 = arith.constant 0 : i32
    return %c0_i32, %arg0 : i32, i32
  }
  func.func @transform_7(%arg0: i32) -> (i32, i32, i32) {
    %c0_i32 = arith.constant 0 : i32
    %c0_i32_0 = arith.constant 0 : i32
    %c0_i32_1 = arith.constant 0 : i32
    return %arg0, %c0_i32, %c0_i32_0 : i32, i32, i32
  }
  func.func @transform_8(%arg0: i32) -> (i32, i32, i32) {
    %c0_i32 = arith.constant 0 : i32
    %c0_i32_0 = arith.constant 0 : i32
    %c0_i32_1 = arith.constant 0 : i32
    return %arg0, %c0_i32, %c0_i32_0 : i32, i32, i32
  }
}

</mosaic_0001>

<bundles_post_ra>
// kernel: rsm1d_forward.7
= control target key start
LH: loop header
LB: loop body
LE: loop exit
PB: predicated region body
PF: predicated region fallthrough
CT: control target
= control target key end

     0   :  { %s285_s12 = smov 0   ;;  %s308_s0 = inlined_call_operand.vmem [shape: f32[8,1], index: 0, kind: input, shape index: {}]   ;;  %s309_s1 = inlined_call_operand.vmem [shape: f32[8,1], index: 1, kind: input, shape index: {}]   ;;  %s310_s2 = inlined_call_operand.vmem [shape: bf16[8,256], index: 2, kind: input, shape index: {}]   ;;  %s311_s3 = inlined_call_operand.vmem [shape: f32[8,256], index: 3, kind: output, shape index: {}]  }
   0x1 LB: > { %s237_s13 = sadd.s32 4294967295, %s262_s12   ;;  %p241_p0 = scmp.ge.s32.totalorder %s262_s12, 1  ;;  %s262_s12 = sphi %s285_s12, %s13_s12  }
   0x2   : > { %p136_p1 = scmp.lt.s32.totalorder %s262_s12, 3 }
   0x4   : > { %p137_p2 = pnand %p241_p0, %p136_p1 }
   0x5   : > { %p158_p3 = scmp.lt.s32.totalorder (!%p137_p2), %s237_s13, 1 }
   0x6   : > { %140 = sbr.rel (%p137_p2) target bundleno = 141 (0x8d), region = 32 }
   0xb   : > { %v168_v0 = vld [vmem:[%s308_s0] sm:$0xff]  ;;  %v264_v1 = vmov 0   ;;  %s313_s13 = smov (!%p158_p3, %s237_s13), 1 }
   0xc   : > { %255 = vset.pattern.permute.xlu0 %v264_v1  ;;  %v175_v2 = vld [vmem:[%s309_s1] sm:$0xff]  ;;  %s242_s18 = sshll.u32 %s313_s13, 2  ;;  %s243_s22 = sshll.u32 %s313_s13, 3 }
   0xd   : > { %171 = vperm.xlu0 %255, %v168_v0   ;;  %s161_s21 = scalar_lea.vmem %s310_s2, %s242_s18  ;;  %s165_s25 = scalar_lea.vmem %s311_s3, %s243_s22 }
   0xe   : > { %v166_v4 = vld [vmem:[%s161_s21] sm:$0xf] }
   0xf   : > { %v167_v5 = vunpack.c.l.bf16 %v166_v4 }
  0x15   : > { %178 = vperm.xlu0 %255, %v175_v2  }
  0x7f   : > { %v172_v3 = vpop.permute.xlu0 %171 }
  0x80   : > { %v174_v6 = vmul.f32 %v172_v3, %v167_v5 }
  0x87   : > { %v179_v7 = vpop.permute.xlu0 %178 }
  0x88   : > { %v181_v8 = vadd.f32 %v179_v7, %v174_v6 }
  0x8a   : > { %v182_v9 = vmax.f32 %v181_v8, 0.0 }
  0x8c   : > { %183 = vst [vmem:[%s165_s25] sm:$0xff] %v182_v9 }
  0x8d PF: > { %s13_s12 = sadd.s32 1, %s262_s12  }
  0x8e   : > { %p10_p4 = scmp.ge.s32.totalorder %s13_s12, 4  }
  0x90   :  { %12 = sbr.rel (!%p10_p4) target bundleno = 1 (0x1), region = 62 }

// kernel: rsm1d_forward.4
= control target key start
LH: loop header
LB: loop body
LE: loop exit
PB: predicated region body
PF: predicated region fallthrough
CT: control target
= control target key end

     0   :  { %s610_s21 = smov 0   ;;  %s667_s0 = inlined_call_operand.vmem [shape: s32[1,128], index: 0, kind: input, shape index: {}]   ;;  %s668_s1 = inlined_call_operand.vmem [shape: f32[4,256], index: 1, kind: input, shape index: {}]   ;;  %s669_s2 = inlined_call_operand.vmem [shape: bf16[4,8,4], index: 2, kind: input, shape index: {}]   ;;  %s670_s3 = inlined_call_operand.vmem [shape: bf16[8,256], index: 3, kind: output, shape index: {0}]   ;;  %s671_s4 = inlined_call_operand.vmem [shape: bf16[8,256], index: 4, kind: output, shape index: {1}]   ;;  %s672_s5 = inlined_call_operand.vmem [shape: f32[2,8,1], index: 5, kind: output, shape index: {2}]   ;;  %s673_s6 = inlined_call_operand.vmem [shape: f32[2,8,1], index: 6, kind: output, shape index: {3}]  }
   0x1 LB: > { %s534_s22 = sadd.s32 4294967295, %s570_s21   ;;  %p538_p0 = scmp.ge.s32.totalorder %s570_s21, 1  ;;  %s570_s21 = sphi %s610_s21, %s17_s21  }
   0x2   : > { %p218_p1 = scmp.lt.s32.totalorder %s570_s21, 3 }
   0x4   : > { %p219_p2 = pnand %p538_p0, %p218_p1 }
   0x5   : > { %p258_p3 = scmp.lt.s32.totalorder (!%p219_p2), %s534_s22, 1  ;;  %s572_s27 = smov (!%p219_p2), 127  }
   0x6   : > { %222 = sbr.rel (%p219_p2) target bundleno = 400 (0x190), region = 32  ;;  %s573_s28 = smov (!%p219_p2), 1  }
   0xb   : > { %s675_s22 = smov (!%p258_p3, %s534_s22), 1  ;;  %vm295_vm0 = vcmask 1041408   ;;  %v544_v3 = vld [vmem:[%s669_s2 + $0x4] sm:$0xf]  ;;  %vm291_vm1 = vcmask 31744   ;;  %v574_v19 = vmov 0  }
   0xc   : > { %s621_s23 = sshll.u32 %s675_s22, 2  ;;  %v549_v4 = vld [vmem:[%s669_s2 + $0xc] sm:$0xf]  ;;  %v547_v8 = vld [vmem:[%s669_s2 + $0x8] sm:$0xf]  ;;  %s542_s24 = sshll.u32 %s675_s22, 3 }
   0xd   : > { %s261_s26 = scalar_lea.vmem %s668_s1, %s621_s23  ;;  %v289_v12 = vld [vmem:[%s669_s2] sm:$0xf]  ;;  %s269_s15 = scalar_lea.vmem %s671_s4, %s621_s23  ;;  %vm382_vm4 = vcmask 7168  }
   0xe   : > { %v281_v0 = vld [vmem:[%s261_s26] sm:$0xf]  ;;  %s265_s20 = scalar_lea.vmem %s670_s3, %s621_s23  ;;  %s277_s23 = scalar_lea.vmem %s673_s6, %s542_s24 }
   0xf   : > { %284 = vrot.lane.b32.xlu0 %v281_v0, %s572_s27  ;;  %v286_v1 = vpack.c.bf16 %v281_v0, %v281_v0  ;;  %v279_v17 = vld [vmem:[%s667_s0] sm:$0x1]  ;;  %s273_s27 = scalar_lea.vmem %s672_s5, %s542_s24 }
  0x10   : > { %vm280_vm2 = vcmp.lt.s32.totalorder %v279_v17, 16 }
  0x11   : > { %v316_v2 = vsel %vm295_vm0, %v286_v1, 0  ;;  %v376_v20 = vsel %vm280_vm2, 1, %v574_v19 }
  0x12   : > { %325 = vmatpush.bf16.msra.mxu1 %v316_v2  ;;  %366 = vmatpush.bf16.msra.mxu3 %v316_v2  ;;  %v377_v22 = vperm.slane %v376_v20, 0 }
  0x14   : > { %vm378_vm3 = vcmp.eq.s32.totalorder %v377_v22, 1 }
  0x15   : > { %546 = vmatmul.msk.bf16.vlgmr.msra.gmra.mxu1 %vm291_vm1, %v544_v3  ;;  %550 = vmatmul.msk.bf16.vlgmr.msra.gmra.mxu3 %vm291_vm1, %v549_v4 }
  0x17   : > { %282 = vrot.lane.b32.xlu0 %v281_v0, %s573_s28 }
  0x81   : > { %v285_v5 = vpop.permute.xlu0 %284 }
  0x82   : > { %v333_v6 = vpack.c.bf16 %v285_v5, %v285_v5 }
  0x84   : > { %v338_v7 = vsel %vm295_vm0, %v333_v6, 0 }
  0x85   : > { %347 = vmatpush.bf16.msra.mxu2 %v338_v7 }
  0x88   : > { %548 = vmatmul.msk.bf16.vlgmr.msra.gmra.mxu2 %vm291_vm1, %v547_v8 }
  0x89   : > { %v283_v9 = vpop.permute.xlu0 %282 }
  0x8a   : > { %v290_v10 = vpack.c.bf16 %v283_v9, %v283_v9 }
  0x8c   : > { %v297_v11 = vsel %vm295_vm0, %v290_v10, 0 }
  0x8d   : > { %306 = vmatpush.bf16.msra.mxu0 %v297_v11 }
  0x90   : > { %545 = vmatmul.msk.bf16.vlgmr.msra.gmra.mxu0 %vm291_vm1, %v289_v12 }
  0x92   : > { %v327_v13 = vpop.f32.mrf.mxu1 }
  0x98   : > { %v368_v15 = vpop.f32.mrf.mxu3 }
  0x99   : > { %v372_v16 = vpack.c.bf16 %v368_v15, %v368_v15 }
  0x9a   : > { %v329_v14 = vpop.f32.mrf.mxu1 }
  0x9b   : > { %373 = vst [vmem:[%s269_s15] sm:$0xf] %v372_v16 }
  0xa0   : > { %v370_v18 = vpop.f32.mrf.mxu3 }
 0x10b   : > { %v349_v21 = vpop.f32.mrf.mxu2 }
 0x10d   : > { %v308_v23 = vpop.f32.mrf.mxu0 }
 0x10e   : > { %v328_v24 = vadd.f32 %v327_v13, %v308_v23 }
 0x110   : > { %v353_v25 = vadd.f32 %v349_v21, %v328_v24 }
 0x112   : > { %v379_v26 = vsel %vm378_vm3, %v353_v25, 0.0  ;;  %v374_v27 = vpack.c.bf16 %v353_v25, %v353_v25 }
 0x113   : > { %v351_v28 = vpop.f32.mrf.mxu2  ;;  %380 = vadd.xlane.f32.xlu1 %v379_v26  ;;  %v384_v30 = vmul.f32 %v379_v26, %v379_v26 }
 0x114   : > { %375 = vst [vmem:[%s265_s20] sm:$0xf] %v374_v27 }
 0x115   : > { %v310_v29 = vpop.f32.mrf.mxu0 }
 0x11b   : > { %385 = vadd.xlane.f32.xlu1 %v384_v30 }
 0x186   : > { %v381_v31 = vpop.xlane.xlu1 %380 }
 0x187   : > { %383 = vst.msk [vmem:[%s273_s27] sm:$0xff] %vm382_vm4, %v381_v31 }
 0x18e   : > { %v386_v32 = vpop.xlane.xlu1 %385 }
 0x18f   : > { %387 = vst.msk [vmem:[%s277_s23] sm:$0xff] %vm382_vm4, %v386_v32 }
 0x190 PF: > { %s17_s21 = sadd.s32 1, %s570_s21  }
 0x191   : > { %p14_p4 = scmp.ge.s32.totalorder %s17_s21, 4  }
 0x193   :  { %16 = sbr.rel (!%p14_p4) target bundleno = 1 (0x1), region = 101 }

// kernel: rsm1d_forward.5
= control target key start
LH: loop header
LB: loop body
LE: loop exit
PB: predicated region body
PF: predicated region fallthrough
CT: control target
= control target key end

     0   :  { %s596_s24 = smov 0   ;;  %s656_s0 = inlined_call_operand.vmem [shape: s32[1,128], index: 0, kind: input, shape index: {}]   ;;  %s657_s1 = inlined_call_operand.vmem [shape: f32[8,1], index: 1, kind: input, shape index: {}]   ;;  %s658_s2 = inlined_call_operand.vmem [shape: f32[8,1], index: 2, kind: input, shape index: {}]   ;;  %s659_s3 = inlined_call_operand.vmem [shape: bf16[8,256], index: 3, kind: input, shape index: {}]   ;;  %s660_s4 = inlined_call_operand.vmem [shape: bf16[3,8,8], index: 4, kind: input, shape index: {}]   ;;  %s661_s5 = inlined_call_operand.vmem [shape: bf16[8,256], index: 5, kind: output, shape index: {0}]   ;;  %s662_s6 = inlined_call_operand.vmem [shape: f32[2,8,1], index: 6, kind: output, shape index: {1}]   ;;  %s663_s7 = inlined_call_operand.vmem [shape: f32[2,8,1], index: 7, kind: output, shape index: {2}]  }
   0x1 LB: > { %s517_s25 = sadd.s32 4294967295, %s551_s24   ;;  %p521_p0 = scmp.ge.s32.totalorder %s551_s24, 1  ;;  %s551_s24 = sphi %s596_s24, %s18_s24  }
   0x2   : > { %p241_p1 = scmp.lt.s32.totalorder %s551_s24, 3 }
   0x4   : > { %p242_p2 = pnand %p521_p0, %p241_p1 }
   0x5   : > { %p279_p3 = scmp.lt.s32.totalorder (!%p242_p2), %s517_s25, 1  ;;  %s554_s13 = smov (!%p242_p2), 127  }
   0x6   : > { %245 = sbr.rel (%p242_p2) target bundleno = 526 (0x20e), region = 40  ;;  %s555_s14 = smov (!%p242_p2), 1  }
   0xb   : > { %v300_v0 = vld [vmem:[%s657_s1] sm:$0xff]  ;;  %v553_v1 = vmov 0   ;;  %s667_s25 = smov (!%p279_p3, %s517_s25), 1  ;;  %vm332_vm2 = vcmask 1043456   ;;  %vm328_vm3 = vcmask 64512   ;;  %vm396_vm4 = vcmask 7168  }
   0xc   : > { %544 = vset.pattern.permute.xlu0 %v553_v1  ;;  %v307_v2 = vld [vmem:[%s658_s2] sm:$0xff]  ;;  %s522_s30 = sshll.u32 %s667_s25, 2  ;;  %v529_v21 = vld [vmem:[%s660_s4 + $0x8] sm:$0xf]  ;;  %s524_s26 = sshll.u32 %s667_s25, 3 }
   0xd   : > { %303 = vperm.xlu0 %544, %v300_v0   ;;  %v296_v3 = vld [vmem:[%s656_s0] sm:$0x1]  ;;  %s282_s12 = scalar_lea.vmem %s659_s3, %s522_s30  ;;  %v526_v17 = vld [vmem:[%s660_s4 + $0x4] sm:$0xf]  ;;  %s286_s23 = scalar_lea.vmem %s661_s5, %s522_s30 }
   0xe   : > { %vm297_vm0 = vcmp.lt.s32.totalorder %v296_v3, 16  ;;  %v298_v5 = vld [vmem:[%s282_s12] sm:$0xf]  ;;  %s290_s29 = scalar_lea.vmem %s662_s6, %s524_s26  ;;  %s294_s9 = scalar_lea.vmem %s663_s7, %s524_s26 }
   0xf   : > { %v315_v6 = vsel %vm297_vm0, 1, %v553_v1  ;;  %v299_v7 = vunpack.c.l.bf16 %v298_v5  ;;  %v326_v25 = vld [vmem:[%s660_s4] sm:$0xf] }
  0x10   : > { %v316_v8 = vperm.slane %v315_v6, 0 }
  0x12   : > { %vm621_vm1 = vcmp.eq.s32.totalorder %v316_v8, 1 }
  0x15   : > { %310 = vperm.xlu0 %544, %v307_v2  }
  0x7f   : > { %v304_v4 = vpop.permute.xlu0 %303 }
  0x80   : > { %v306_v9 = vmul.f32 %v304_v4, %v299_v7 }
  0x87   : > { %v311_v10 = vpop.permute.xlu0 %310 }
  0x88   : > { %v313_v11 = vadd.f32 %v311_v10, %v306_v9 }
  0x8a   : > { %v314_v13 = vmax.f32 %v313_v11, 0.0 }
  0x8c   : > { %v318_v14 = vsel %vm621_vm1, %v314_v13, 0.0 }
  0x8d   : > { %321 = vrot.lane.b32.xlu1 %v318_v14, %s554_s13  ;;  %v323_v15 = vpack.c.bf16 %v318_v14, %v318_v14 }
  0x8f   : > { %v353_v16 = vsel %vm332_vm2, %v323_v15, 0 }
  0x90   : > { %362 = vmatpush.bf16.msra.mxu1 %v353_v16 }
  0x93   : > { %528 = vmatmul.msk.bf16.vlgmr.msra.gmra.mxu1 %vm328_vm3, %v526_v17 }
  0x95   : > { %319 = vrot.lane.b32.xlu1 %v318_v14, %s555_s14 }
  0xff   : > { %v322_v18 = vpop.permute.xlu1 %321 }
 0x100   : > { %v370_v19 = vpack.c.bf16 %v322_v18, %v322_v18 }
 0x102   : > { %v375_v20 = vsel %vm332_vm2, %v370_v19, 0 }
 0x103   : > { %384 = vmatpush.bf16.msra.mxu2 %v375_v20 }
 0x106   : > { %530 = vmatmul.msk.bf16.vlgmr.msra.gmra.mxu2 %vm328_vm3, %v529_v21 }
 0x107   : > { %v320_v22 = vpop.permute.xlu1 %319 }
 0x108   : > { %v327_v23 = vpack.c.bf16 %v320_v22, %v320_v22 }
 0x10a   : > { %v334_v24 = vsel %vm332_vm2, %v327_v23, 0 }
 0x10b   : > { %343 = vmatpush.bf16.msra.mxu0 %v334_v24 }
 0x10e   : > { %527 = vmatmul.msk.bf16.vlgmr.msra.gmra.mxu0 %vm328_vm3, %v326_v25 }
 0x110   : > { %v364_v26 = vpop.f32.mrf.mxu1 }
 0x118   : > { %v366_v27 = vpop.f32.mrf.mxu1 }
 0x189   : > { %v386_v28 = vpop.f32.mrf.mxu2 }
 0x18b   : > { %v345_v29 = vpop.f32.mrf.mxu0 }
 0x18c   : > { %v365_v30 = vadd.f32 %v364_v26, %v345_v29 }
 0x18e   : > { %v390_v31 = vadd.f32 %v386_v28, %v365_v30 }
 0x190   : > { %v393_v32 = vsel %vm621_vm1, %v390_v31, 0.0  ;;  %v391_v33 = vpack.c.bf16 %v390_v31, %v390_v31 }
 0x191   : > { %v388_v34 = vpop.f32.mrf.mxu2  ;;  %394 = vadd.xlane.f32.xlu2 %v393_v32  ;;  %v398_v36 = vmul.f32 %v393_v32, %v393_v32 }
 0x192   : > { %392 = vst [vmem:[%s286_s23] sm:$0xf] %v391_v33 }
 0x193   : > { %v347_v35 = vpop.f32.mrf.mxu0 }
 0x199   : > { %399 = vadd.xlane.f32.xlu2 %v398_v36 }
 0x204   : > { %v395_v37 = vpop.xlane.xlu2 %394 }
 0x205   : > { %397 = vst.msk [vmem:[%s290_s29] sm:$0xff] %vm396_vm4, %v395_v37 }
 0x20c   : > { %v400_v38 = vpop.xlane.xlu2 %399 }
 0x20d   : > { %401 = vst.msk [vmem:[%s294_s9] sm:$0xff] %vm396_vm4, %v400_v38 }
 0x20e PF: > { %s18_s24 = sadd.s32 1, %s551_s24  }
 0x20f   : > { %p15_p4 = scmp.ge.s32.totalorder %s18_s24, 4  }
 0x211   :  { %17 = sbr.rel (!%p15_p4) target bundleno = 1 (0x1), region = 96 }

// kernel: rsm1d_forward.6
= control target key start
LH: loop header
LB: loop body
LE: loop exit
PB: predicated region body
PF: predicated region fallthrough
CT: control target
= control target key end

     0   :  { %s661_s27 = smov 0   ;;  %s725_s0 = inlined_call_operand.vmem [shape: s32[1,128], index: 0, kind: input, shape index: {}]   ;;  %s726_s1 = inlined_call_operand.vmem [shape: f32[8,1], index: 1, kind: input, shape index: {}]   ;;  %s727_s2 = inlined_call_operand.vmem [shape: f32[8,1], index: 2, kind: input, shape index: {}]   ;;  %s728_s3 = inlined_call_operand.vmem [shape: bf16[8,256], index: 3, kind: input, shape index: {}]   ;;  %s729_s4 = inlined_call_operand.vmem [shape: bf16[3,8,8], index: 4, kind: input, shape index: {}]   ;;  %s730_s5 = inlined_call_operand.vmem [shape: bf16[8,256], index: 5, kind: input, shape index: {}]   ;;  %s731_s6 = inlined_call_operand.vmem [shape: bf16[8,256], index: 6, kind: output, shape index: {0}]   ;;  %s732_s7 = inlined_call_operand.vmem [shape: f32[2,8,1], index: 7, kind: output, shape index: {1}]   ;;  %s733_s8 = inlined_call_operand.vmem [shape: f32[2,8,1], index: 8, kind: output, shape index: {2}]  }
   0x1 LB: > { %s576_s28 = sadd.s32 4294967295, %s611_s27   ;;  %p580_p0 = scmp.ge.s32.totalorder %s611_s27, 1  ;;  %s611_s27 = sphi %s661_s27, %s19_s27  }
   0x2   : > { %p275_p1 = scmp.lt.s32.totalorder %s611_s27, 3 }
   0x4   : > { %p276_p2 = pnand %p580_p0, %p275_p1 }
   0x5   : > { %p319_p3 = scmp.lt.s32.totalorder (!%p276_p2), %s576_s28, 1  ;;  %s614_s17 = smov (!%p276_p2), 127  }
   0x6   : > { %279 = sbr.rel (%p276_p2) target bundleno = 528 (0x210), region = 44  ;;  %s615_s18 = smov (!%p276_p2), 1  }
   0xb   : > { %v344_v0 = vld [vmem:[%s726_s1] sm:$0xff]  ;;  %v613_v1 = vmov 0   ;;  %s737_s28 = smov (!%p319_p3, %s576_s28), 1  ;;  %vm376_vm2 = vcmask 1043456   ;;  %vm372_vm3 = vcmask 64512   ;;  %vm443_vm4 = vcmask 7168  }
   0xc   : > { %604 = vset.pattern.permute.xlu0 %v613_v1  ;;  %v351_v2 = vld [vmem:[%s727_s2] sm:$0xff]  ;;  %s678_s11 = sshll.u32 %s737_s28, 2  ;;  %v589_v21 = vld [vmem:[%s729_s4 + $0x8] sm:$0xf]  ;;  %s584_s12 = sshll.u32 %s737_s28, 3 }
   0xd   : > { %347 = vperm.xlu0 %604, %v344_v0   ;;  %v340_v3 = vld [vmem:[%s725_s0] sm:$0x1]  ;;  %s322_s16 = scalar_lea.vmem %s728_s3, %s678_s11  ;;  %v586_v17 = vld [vmem:[%s729_s4 + $0x4] sm:$0xf]  ;;  %s326_s29 = scalar_lea.vmem %s730_s5, %s678_s11 }
   0xe   : > { %vm341_vm0 = vcmp.lt.s32.totalorder %v340_v3, 16  ;;  %v342_v5 = vld [vmem:[%s322_s16] sm:$0xf]  ;;  %s330_s10 = scalar_lea.vmem %s731_s6, %s678_s11  ;;  %s334_s15 = scalar_lea.vmem %s732_s7, %s584_s12 }
   0xf   : > { %v359_v6 = vsel %vm341_vm0, 1, %v613_v1  ;;  %v343_v7 = vunpack.c.l.bf16 %v342_v5  ;;  %v370_v25 = vld [vmem:[%s729_s4] sm:$0xf]  ;;  %s338_s11 = scalar_lea.vmem %s733_s8, %s584_s12 }
  0x10   : > { %v360_v8 = vperm.slane %v359_v6, 0  ;;  %v435_v29 = vld [vmem:[%s326_s29] sm:$0xf] }
  0x11   : > { %v436_v32 = vunpack.c.l.bf16 %v435_v29 }
  0x12   : > { %vm687_vm1 = vcmp.eq.s32.totalorder %v360_v8, 1 }
  0x15   : > { %354 = vperm.xlu0 %604, %v351_v2  }
  0x7f   : > { %v348_v4 = vpop.permute.xlu0 %347 }
  0x80   : > { %v350_v9 = vmul.f32 %v348_v4, %v343_v7 }
  0x87   : > { %v355_v10 = vpop.permute.xlu0 %354 }
  0x88   : > { %v357_v11 = vadd.f32 %v355_v10, %v350_v9 }
  0x8a   : > { %v358_v13 = vmax.f32 %v357_v11, 0.0 }
  0x8c   : > { %v362_v14 = vsel %vm687_vm1, %v358_v13, 0.0 }
  0x8d   : > { %365 = vrot.lane.b32.xlu1 %v362_v14, %s614_s17  ;;  %v367_v15 = vpack.c.bf16 %v362_v14, %v362_v14 }
  0x8f   : > { %v397_v16 = vsel %vm376_vm2, %v367_v15, 0 }
  0x90   : > { %406 = vmatpush.bf16.msra.mxu1 %v397_v16 }
  0x93   : > { %588 = vmatmul.msk.bf16.vlgmr.msra.gmra.mxu1 %vm372_vm3, %v586_v17 }
  0x95   : > { %363 = vrot.lane.b32.xlu1 %v362_v14, %s615_s18 }
  0xff   : > { %v366_v18 = vpop.permute.xlu1 %365 }
 0x100   : > { %v414_v19 = vpack.c.bf16 %v366_v18, %v366_v18 }
 0x102   : > { %v419_v20 = vsel %vm376_vm2, %v414_v19, 0 }
 0x103   : > { %428 = vmatpush.bf16.msra.mxu2 %v419_v20 }
 0x106   : > { %590 = vmatmul.msk.bf16.vlgmr.msra.gmra.mxu2 %vm372_vm3, %v589_v21 }
 0x107   : > { %v364_v22 = vpop.permute.xlu1 %363 }
 0x108   : > { %v371_v23 = vpack.c.bf16 %v364_v22, %v364_v22 }
 0x10a   : > { %v378_v24 = vsel %vm376_vm2, %v371_v23, 0 }
 0x10b   : > { %387 = vmatpush.bf16.msra.mxu0 %v378_v24 }
 0x10e   : > { %587 = vmatmul.msk.bf16.vlgmr.msra.gmra.mxu0 %vm372_vm3, %v370_v25 }
 0x110   : > { %v408_v26 = vpop.f32.mrf.mxu1 }
 0x118   : > { %v410_v27 = vpop.f32.mrf.mxu1 }
 0x189   : > { %v430_v28 = vpop.f32.mrf.mxu2 }
 0x18b   : > { %v389_v30 = vpop.f32.mrf.mxu0 }
 0x18c   : > { %v409_v31 = vadd.f32 %v408_v26, %v389_v30 }
 0x18e   : > { %v434_v33 = vadd.f32 %v430_v28, %v409_v31 }
 0x190   : > { %v437_v34 = vadd.f32 %v436_v32, %v434_v33 }
 0x191   : > { %v432_v35 = vpop.f32.mrf.mxu2 }
 0x192   : > { %v440_v36 = vsel %vm687_vm1, %v437_v34, 0.0  ;;  %v438_v37 = vpack.c.bf16 %v437_v34, %v437_v34 }
 0x193   : > { %v391_v38 = vpop.f32.mrf.mxu0  ;;  %441 = vadd.xlane.f32.xlu2 %v440_v36  ;;  %v445_v39 = vmul.f32 %v440_v36, %v440_v36 }
 0x194   : > { %439 = vst [vmem:[%s330_s10] sm:$0xf] %v438_v37 }
 0x19b   : > { %446 = vadd.xlane.f32.xlu2 %v445_v39 }
 0x206   : > { %v442_v40 = vpop.xlane.xlu2 %441 }
 0x207   : > { %444 = vst.msk [vmem:[%s334_s15] sm:$0xff] %vm443_vm4, %v442_v40 }
 0x20e   : > { %v447_v41 = vpop.xlane.xlu2 %446 }
 0x20f   : > { %448 = vst.msk [vmem:[%s338_s11] sm:$0xff] %vm443_vm4, %v447_v41 }
 0x210 PF: > { %s19_s27 = sadd.s32 1, %s611_s27  }
 0x211   : > { %p16_p4 = scmp.ge.s32.totalorder %s19_s27, 4  }
 0x213   :  { %18 = sbr.rel (!%p16_p4) target bundleno = 1 (0x1), region = 103 }

</bundles_post_ra>
